<compile_context>
chip_gen: v6e
topology: v6e:2x2x1
jax: 0.10.0
libtpu: 0.0.40
codegen_flags: <defaults>
</compile_context>

<pallas_src>
import functools

import jax
import jax.numpy as jnp
from jax.experimental import pallas as pl
from jax.experimental.pallas import tpu as pltpu


def _round_up(x: int, m: int) -> int:
    return (x + m - 1) // m * m


def _device_kind() -> str:
    try:
        return jax.devices()[0].device_kind.lower()
    except Exception:  # pragma: no cover - defensive only
        return ""


def _use_bf16_activations(kind: str) -> bool:
    # bf16 VPU/EUP exist on v6e and newer; keep the (always-correct) f32
    # elementwise path on v5e and older / unknown chips.
    return ("v6" in kind) or ("v7" in kind) or ("7x" in kind)


def _num_tensorcores(kind: str) -> int:
    # v7x has 2 TensorCores per chip; older chips have 1.
    return 2 if ("v7" in kind or "7x" in kind) else 1


def value_mlp_kernel(x_ref, w1_ref, w2_ref, b12_ref, w4_ref, b4_ref, o_ref,
                     *, act_dtype):
    # Cast the streamed f32 state tile to bf16 at the MXU boundary (in-kernel,
    # so the wrapper never rewrites the activations in HBM).
    x = x_ref[...].astype(jnp.bfloat16)

    # Layer 1: bf16 x bf16 on the MXU, f32 accumulation.
    h1 = jnp.dot(x, w1_ref[...], preferred_element_type=jnp.float32)
    # Bias + tanh in act_dtype: bf16 on v6e/v7x (bf16 VPU/EUP), f32 on v5e.
    h1 = jnp.tanh(h1.astype(act_dtype) + b12_ref[0:1, :])

    # Layer 2: activation hits the MXU in bf16 (no-op cast on the bf16 path).
    h2 = jnp.dot(h1.astype(jnp.bfloat16), w2_ref[...],
                 preferred_element_type=jnp.float32)
    h2 = jnp.tanh(h2.astype(act_dtype) + b12_ref[1:2, :])

    # Output head: N=1 matmul replaced by a VPU multiply + cross-lane reduce.
    # w4 is kept f32 so the product/reduction accumulate in f32 on both paths;
    # b4 is a scalar read from SMEM.
    val = jnp.sum((h2 * w4_ref[...]).astype(jnp.float32), axis=-1, keepdims=True)
    val = val + b4_ref[0]

    # NOTE: last-dim-1 store is a masked vst; negligible here. If this head
    # ever feeds further in-kernel work, write into a lane-dense slab instead.
    o_ref[...] = val.astype(o_ref.dtype)


def pack_params(w1, b1, w2, b2, w4, b4, *, use_bf16_act: bool = False):
    """One-time parameter preprocessing (call at init, not per forward).

    Weights are stored as (in_features, out_features) so the kernel computes
    x @ W + b (numerically equivalent to torch Linear with W of shape (out, in)).
    """
    act = jnp.bfloat16 if use_bf16_act else jnp.float32
    H = w1.shape[1]
    w1_b = w1.astype(jnp.bfloat16)
    w2_b = w2.astype(jnp.bfloat16)
    b12 = jnp.stack([b1, b2], axis=0).astype(act)      # (2, H): one resident tile
    w4_row = w4.reshape(1, H).astype(jnp.float32)      # (1, H) for the VPU head
    b4_s = b4.reshape(1).astype(jnp.float32)           # scalar -> SMEM
    return w1_b, w2_b, b12, w4_row, b4_s


@functools.partial(jax.jit, static_argnames=("tile_b",))
def value_mlp(state, w1_b, w2_b, b12, w4_row, b4_s, *, tile_b: int = 1024):
    """state: (B, D) float32; packed params from pack_params. Returns (B, 1) f32."""
    B, D = state.shape
    H = w1_b.shape[1]

    # Clamp the user tile to a multiple of 16 (safe for any streamed dtype).
    tile_b = max(16, (int(tile_b) // 16) * 16)

    kind = _device_kind()
    n_split = _num_tensorcores(kind)

    if B > tile_b:
        tb = tile_b
    else:
        # Whole batch in (at most) n_split steps; on v7x split so the
        # "parallel" grid feeds both TensorCores. f32/ f32 streamed refs only
        # need sublane (8) alignment on the tile.
        tb = min(tile_b, _round_up(max(1, pl.cdiv(B, n_split)), 8))
    grid = (pl.cdiv(B, tb),)   # ragged last block: reads padded, writes masked

    kernel = functools.partial(value_mlp_kernel, act_dtype=b12.dtype)

    out = pl.pallas_call(
        kernel,
        out_shape=jax.ShapeDtypeStruct((B, 1), jnp.float32),
        grid=grid,
        in_specs=[
            # Streamed f32 state tile (auto double-buffered across grid steps).
            pl.BlockSpec((tb, D), lambda i: (i, 0)),
            # Weights / packed biases: constant block index -> stay resident.
            pl.BlockSpec((D, H), lambda i: (0, 0)),
            pl.BlockSpec((H, H), lambda i: (0, 0)),
            pl.BlockSpec((2, H), lambda i: (0, 0)),
            pl.BlockSpec((1, H), lambda i: (0, 0)),
            # Scalar output bias in SMEM (no padded VMEM tile / extra DMA).
            pl.BlockSpec(memory_space=pltpu.MemorySpace.SMEM),
        ],
        out_specs=pl.BlockSpec((tb, 1), lambda i: (i, 0)),
        compiler_params=pltpu.CompilerParams(
            dimension_semantics=("parallel",),   # megacore-shard batch on v7x
        ),
    )(state, w1_b, w2_b, b12, w4_row, b4_s)

    return out


def init_params(key, state_dim, hidden_dim):
    """Deterministic PyTorch-Linear-style init: U(-1/sqrt(fan_in), 1/sqrt(fan_in))."""
    ks = jax.random.split(key, 6)

    def lin(kw, kb, fan_in, fan_out):
        bound = 1.0 / jnp.sqrt(fan_in)
        w = jax.random.uniform(kw, (fan_in, fan_out), jnp.float32, -bound, bound)
        b = jax.random.uniform(kb, (fan_out,), jnp.float32, -bound, bound)
        return w, b

    w1, b1 = lin(ks[0], ks[1], state_dim, hidden_dim)
    w2, b2 = lin(ks[2], ks[3], hidden_dim, hidden_dim)
    w4, b4 = lin(ks[4], ks[5], hidden_dim, 1)
    return w1, b1, w2, b2, w4, b4


if __name__ == "__main__":
    key = jax.random.PRNGKey(0)
    k_x, k_p = jax.random.split(key)

    B, STATE_DIM, HIDDEN = 8, 16, 32   # small shapes consistent with a 1-D state space
    state = jax.random.normal(k_x, (B, STATE_DIM), jnp.float32)
    raw = init_params(k_p, STATE_DIM, HIDDEN)

    kind = _device_kind()
    use_bf16_act = _use_bf16_activations(kind)
    packed = pack_params(*raw, use_bf16_act=use_bf16_act)   # once, at init time

    out = value_mlp(state, *packed)
    out = jax.block_until_ready(out)
    assert out.shape == (B, 1)

    # Reference replicating the kernel's mixed-precision schedule.
    w1, b1, w2, b2, w4, b4 = raw
    act = jnp.bfloat16 if use_bf16_act else jnp.float32
    xb = state.astype(jnp.bfloat16)
    h1 = jnp.dot(xb, w1.astype(jnp.bfloat16), preferred_element_type=jnp.float32)
    h1 = jnp.tanh(h1.astype(act) + b1.astype(act))
    h2 = jnp.dot(h1.astype(jnp.bfloat16), w2.astype(jnp.bfloat16),
                 preferred_element_type=jnp.float32)
    h2 = jnp.tanh(h2.astype(act) + b2.astype(act))
    ref_mixed = (jnp.sum((h2 * w4.reshape(1, -1)).astype(jnp.float32),
                         axis=-1, keepdims=True) + b4)
    assert jnp.allclose(out, ref_mixed, atol=1e-2, rtol=1e-2)

    # Loose sanity check against the pure-f32 PyTorch-equivalent forward
    # (difference is bf16 weight/activation rounding only).
    ref_f32 = jnp.tanh(state @ w1 + b1)
    ref_f32 = jnp.tanh(ref_f32 @ w2 + b2)
    ref_f32 = ref_f32 @ w4 + b4
    assert jnp.allclose(out, ref_f32, atol=8e-2, rtol=8e-2)

    print("KERNEL_OK")
</pallas_src>

<mosaic_0001>
module attributes {stable_mosaic.version = 11 : i64} {
  func.func @value_mlp_kernel(%arg0: i32, %arg1: memref<8x16xf32, #tpu.memory_space<vmem>>, %arg2: memref<16x32xbf16, #tpu.memory_space<vmem>>, %arg3: memref<32x32xbf16, #tpu.memory_space<vmem>>, %arg4: memref<2x32xf32, #tpu.memory_space<vmem>>, %arg5: memref<1x32xf32, #tpu.memory_space<vmem>>, %arg6: memref<1xf32, #tpu.memory_space<smem>>, %arg7: memref<8x1xf32, #tpu.memory_space<vmem>>) attributes {dimension_semantics = [#tpu.dimension_semantics<parallel>], iteration_bounds = array<i64: 1>, scalar_prefetch = 0 : i64, scratch_operands = 0 : i64, tpu.core_type = #tpu.core_type<tc>, window_params = [{transform_indices = @transform_0, window_bounds = array<i64: 8, 16>}, {pipeline_mode = #tpu.pipeline_mode<synchronous>, transform_indices = @transform_1, window_bounds = array<i64: 16, 32>}, {pipeline_mode = #tpu.pipeline_mode<synchronous>, transform_indices = @transform_2, window_bounds = array<i64: 32, 32>}, {pipeline_mode = #tpu.pipeline_mode<synchronous>, transform_indices = @transform_3, window_bounds = array<i64: 2, 32>}, {pipeline_mode = #tpu.pipeline_mode<synchronous>, transform_indices = @transform_4, window_bounds = array<i64: 1, 32>}, {transform_indices = @transform_5, window_bounds = array<i64: 1>}, {transform_indices = @transform_6, window_bounds = array<i64: 8, 1>}]} {
    %c0 = arith.constant 0 : index
    %c0_0 = arith.constant 0 : index
    %0 = vector.load %arg1[%c0, %c0_0] : memref<8x16xf32, #tpu.memory_space<vmem>>, vector<8x16xf32>
    %1 = arith.truncf %0 : vector<8x16xf32> to vector<8x16xbf16>
    %c0_1 = arith.constant 0 : index
    %c0_2 = arith.constant 0 : index
    %2 = vector.load %arg2[%c0_1, %c0_2] : memref<16x32xbf16, #tpu.memory_space<vmem>>, vector<16x32xbf16>
    %cst = arith.constant dense<0.000000e+00> : vector<8x32xf32>
    %3 = tpu.matmul %1, %2, %cst {dimension_numbers = #tpu.dot_dimension_numbers<[1], [0], [0], [1], [0, 0, 1, 1], [], []>} : vector<8x16xbf16>, vector<16x32xbf16>, vector<8x32xf32> -> vector<8x32xf32>
    %c0_3 = arith.constant 0 : index
    %c0_4 = arith.constant 0 : index
    %4 = vector.load %arg4[%c0_3, %c0_4] : memref<2x32xf32, #tpu.memory_space<vmem>>, vector<1x32xf32>
    %5 = vector.broadcast %4 : vector<1x32xf32> to vector<8x32xf32>
    %6 = arith.addf %3, %5 : vector<8x32xf32>
    %7 = math.tanh %6 : vector<8x32xf32>
    %8 = arith.truncf %7 : vector<8x32xf32> to vector<8x32xbf16>
    %c0_5 = arith.constant 0 : index
    %c0_6 = arith.constant 0 : index
    %9 = vector.load %arg3[%c0_5, %c0_6] : memref<32x32xbf16, #tpu.memory_space<vmem>>, vector<32x32xbf16>
    %cst_7 = arith.constant dense<0.000000e+00> : vector<8x32xf32>
    %10 = tpu.matmul %8, %9, %cst_7 {dimension_numbers = #tpu.dot_dimension_numbers<[1], [0], [0], [1], [0, 0, 1, 1], [], []>} : vector<8x32xbf16>, vector<32x32xbf16>, vector<8x32xf32> -> vector<8x32xf32>
    %c1 = arith.constant 1 : index
    %c0_8 = arith.constant 0 : index
    %11 = vector.load %arg4[%c1, %c0_8] : memref<2x32xf32, #tpu.memory_space<vmem>>, vector<1x32xf32>
    %12 = vector.broadcast %11 : vector<1x32xf32> to vector<8x32xf32>
    %13 = arith.addf %10, %12 : vector<8x32xf32>
    %14 = math.tanh %13 : vector<8x32xf32>
    %c0_9 = arith.constant 0 : index
    %c0_10 = arith.constant 0 : index
    %15 = vector.load %arg5[%c0_9, %c0_10] : memref<1x32xf32, #tpu.memory_space<vmem>>, vector<1x32xf32>
    %16 = vector.broadcast %15 : vector<1x32xf32> to vector<8x32xf32>
    %17 = arith.mulf %14, %16 : vector<8x32xf32>
    %cst_11 = arith.constant dense<0.000000e+00> : vector<8xf32>
    %18 = vector.multi_reduction <add>, %17, %cst_11 [1] : vector<8x32xf32> to vector<8xf32>
    %19 = vector.shape_cast %18 : vector<8xf32> to vector<8x1xf32>
    %c0_12 = arith.constant 0 : index
    %20 = memref.load %arg6[%c0_12] : memref<1xf32, #tpu.memory_space<smem>>
    %21 = vector.broadcast %20 : f32 to vector<8x1xf32>
    %22 = arith.addf %19, %21 : vector<8x1xf32>
    %c0_13 = arith.constant 0 : index
    %c0_14 = arith.constant 0 : index
    %23 = vector.load %arg7[%c0_13, %c0_14] : memref<8x1xf32, #tpu.memory_space<vmem>>, vector<8x1xf32>
    tpu.vector_store %arg7[%c0_13, %c0_14], %22 {strides = array<i32>} : memref<8x1xf32, #tpu.memory_space<vmem>>, vector<8x1xf32>,
    return
  }
  func.func @transform_0(%arg0: i32) -> (i32, i32) {
    %c0_i32 = arith.constant 0 : i32
    %c0_i32_0 = arith.constant 0 : i32
    return %arg0, %c0_i32 : i32, i32
  }
  func.func @transform_1(%arg0: i32) -> (i32, i32) {
    %c0_i32 = arith.constant 0 : i32
    %c0_i32_0 = arith.constant 0 : i32
    %c0_i32_1 = arith.constant 0 : i32
    return %c0_i32, %c0_i32_0 : i32, i32
  }
  func.func @transform_2(%arg0: i32) -> (i32, i32) {
    %c0_i32 = arith.constant 0 : i32
    %c0_i32_0 = arith.constant 0 : i32
    %c0_i32_1 = arith.constant 0 : i32
    return %c0_i32, %c0_i32_0 : i32, i32
  }
  func.func @transform_3(%arg0: i32) -> (i32, i32) {
    %c0_i32 = arith.constant 0 : i32
    %c0_i32_0 = arith.constant 0 : i32
    %c0_i32_1 = arith.constant 0 : i32
    return %c0_i32, %c0_i32_0 : i32, i32
  }
  func.func @transform_4(%arg0: i32) -> (i32, i32) {
    %c0_i32 = arith.constant 0 : i32
    %c0_i32_0 = arith.constant 0 : i32
    %c0_i32_1 = arith.constant 0 : i32
    return %c0_i32, %c0_i32_0 : i32, i32
  }
  func.func @transform_5(%arg0: i32) -> i32 {
    %c0_i32 = arith.constant 0 : i32
    %c0_i32_0 = arith.constant 0 : i32
    return %c0_i32 : i32
  }
  func.func @transform_6(%arg0: i32) -> (i32, i32) {
    %c0_i32 = arith.constant 0 : i32
    %c0_i32_0 = arith.constant 0 : i32
    return %arg0, %c0_i32 : i32, i32
  }
}

</mosaic_0001>

<bundles_post_ra>
// kernel: value_mlp.1
= control target key start
LH: loop header
LB: loop body
LE: loop exit
PB: predicated region body
PF: predicated region fallthrough
CT: control target
= control target key end

     0   :  { %12 = vsyncpa [#allocation4], 0  ;;  %s384_s0 = inlined_call_operand.hbm [shape: f32[8,16], index: 0, kind: input, shape index: {}]   ;;  %s385_s1 = inlined_call_operand.hbm [shape: bf16[16,32], index: 1, kind: input, shape index: {}]   ;;  %s386_s2 = inlined_call_operand.hbm [shape: bf16[32,32], index: 2, kind: input, shape index: {}]   ;;  %s387_s3 = inlined_call_operand.vmem [shape: f32[2,32], index: 3, kind: input, shape index: {}]   ;;  %s388_s4 = inlined_call_operand.vmem [shape: f32[1,32], index: 4, kind: input, shape index: {}]   ;;  %s389_s5 = inlined_call_operand.<no memory space> [shape: f32[1], index: 5, kind: input, shape index: {}]   ;;  %s390_s6 = inlined_call_operand.vmem [shape: f32[8,1], index: 6, kind: output, shape index: {}]  }
   0x1   :  { %13 = vsyncpa [#allocation6], 0  ;;  %s318_s21 = smov [#allocation5]  }
   0x2   :  { %s29_s22 = sshll.u32 %s318_s21, 4  ;;  %s30_s22 = int_to_ptr.vmem [resolvable:$true] %s29_s22 }
   0x3   :  { %s262_s23 = scalar_lea.vmem %s30_s22, 128  ;;  %p267_p1 = scmp.lt.s32.totalorder %s30_s22, %s30_s22 }
   0x4   :  { %p263_p0 = scmp.ne.s32.totalorder %s30_s22, %s262_s23  ;;  %p268_p2 = scmp.lt.s32.totalorder %s262_s23, %s262_s23 }
   0x6   :  { %p269_p3 = por %p268_p2, %p267_p1 }
   0x8   :  { %p270_p4 = pnand %p269_p3, %p263_p0 }
   0xa   :  { %273 = shalt.err (!%p270_p4)
}
   0xb   :  { %s319_s24 = smov 64   ;;  %s320_s25 = smov 4  }
   0xc   :  { %35 = dma.hbm_to_vmem [thread:$0]  %s385_s1, 128, %s30_s22, [#allocation6], %s319_s24, %s319_s24, %s320_s25  }
   0xd   :  { %s321_s28 = smov [#allocation3]   ;;  %s322_s30 = smov [#allocation7]  }
   0xe   :  { %s20_s29 = sshll.u32 %s321_s28, 4  ;;  %s41_s7 = sshll.u32 %s322_s30, 4  ;;  %s21_s29 = int_to_ptr.vmem [resolvable:$true] %s20_s29  ;;  %s42_s7 = int_to_ptr.vmem [resolvable:$true] %s41_s7 }
   0xf   :  { %s282_s8 = scalar_lea.vmem %s21_s29, 128  ;;  %p287_p6 = scmp.lt.s32.totalorder %s21_s29, %s21_s29 }
  0x10   :  { %p283_p5 = scmp.ne.s32.totalorder %s21_s29, %s282_s8  ;;  %p288_p7 = scmp.lt.s32.totalorder %s282_s8, %s282_s8 }
  0x12   :  { %p289_p8 = por %p288_p7, %p287_p6 }
  0x14   :  { %p290_p9 = pnand %p289_p8, %p283_p5 }
  0x16   :  { %293 = shalt.err (!%p290_p9)
}
  0x17   :  { %23 = dma.hbm_to_vmem [thread:$0]  %s384_s0, 128, %s21_s29, [#allocation4]  }
  0x18   :  { %s302_s11 = scalar_lea.vmem %s42_s7, 256  ;;  %p307_p11 = scmp.lt.s32.totalorder %s42_s7, %s42_s7 }
  0x19   :  { %p303_p10 = scmp.ne.s32.totalorder %s42_s7, %s302_s11  ;;  %p308_p12 = scmp.lt.s32.totalorder %s302_s11, %s302_s11 }
  0x1b   :  { %p309_p13 = por %p308_p12, %p307_p11 }
  0x1d   :  { %p310_p0 = pnand %p309_p13, %p303_p10 }
  0x1f   :  { %313 = shalt.err (!%p310_p0)
}
  0x20   :  { %47 = dma.hbm_to_vmem [thread:$0]  %s386_s2, 256, %s42_s7, [#allocation6], %s319_s24, %s319_s24, %s320_s25  }
  0x21   :  { %314 = dma.done.wait [#allocation4], 128  }
  0x22   :  { %315 = vsyncadd [#allocation4], 4294967168 }
  0x23   :  { %316 = dma.done.wait [#allocation6], 384  }
  0x24   :  { %317 = vsyncadd [#allocation6], 4294966912  ;;  %v323_v0 = vmov 0.0   ;;  %vm324_vm0 = vmmov 0   ;;  %v247_v1 = vld [vmem:[#allocation5] sm:$0xff]   ;;  %v64_v2 = vld [vmem:[#allocation3] sm:$0xff]  ;;  %v203_v24 = vstv %s389_s5 }
  0x25   :  { %226 = vmatprep.subr.bf16.mxu0 %v323_v0  ;;  %228 = vmatprep.mubr.msk.bf16.mxu0 %vm324_vm0, %v323_v0  ;;  %vm79_vm1 = vcmask 130048   ;;  %v65_v3 = vpack.c.bf16 %v64_v2, %v64_v2  ;;  %v248_v4 = vld [vmem:[#allocation7 + $0x8] sm:$0xff]   ;;  %v249_v5 = vld [vmem:[#allocation7] sm:$0xff]   ;;  %v213_v6 = vld [vmem:[%s387_s3] ss:$0 sm:$0xff]  ;;  %vm146_vm2 = vcmask 261120  }
  0x26   :  { %232 = vmatprep.subr.bf16.mxu1 %v323_v0  ;;  %236 = vmatprep.mubr.msk.bf16.mxu1 %vm324_vm0, %v323_v0  ;;  %v216_v14 = vld [vmem:[%s387_s3 + $0x1] ss:$0 sm:$0xff]  ;;  %v220_v20 = vld [vmem:[%s388_s4] ss:$0 sm:$0xff]  ;;  %vm205_vm3 = vcmask 7168  }
  0x27   :  { %227 = vmatpush3.bf16.msra.mxu0 %v247_v1  ;;  %233 = vmatpush3.bf16.msra.mxu1 %v248_v4 }
  0x28   :  { %234 = vmatprep.subr.bf16.mxu1 %v323_v0 }
  0x2a   :  { %229 = vmatmul.mubr.msk.bf16.vlgmr.msra.gmra.mxu0 %vm79_vm1, %v65_v3 }
  0x2b   :  { %235 = vmatpush3.bf16.msra.mxu1 %v249_v5 }
  0xea   :  { %v117_v7 = vpop.f32.mrf.mxu0 }
  0xeb   :  { %v118_v8 = vadd.f32 %v213_v6, %v117_v7 }
  0xec   :  { %v230_v9 = vpop.f32.mrf.mxu0 }
  0xed   :  { %250 = vtanh.f32 %v118_v8 }
  0xee   :  { %v120_v10 = vpop.f32.mrf.mxu0 }
  0xf0   :  { %v231_v11 = vpop.f32.mrf.mxu0 }
  0xfa   :  { %v251_v12 = vpop.eup %250 }
  0xfb   :  { %v124_v13 = vpack.c.bf16 %v251_v12, %v251_v12 }
  0xfd   :  { %237 = vmatmul.mubr.msk.bf16.vlgmr.msra.gmra.mxu1 %vm146_vm2, %v124_v13 }
 0x1bd   :  { %v184_v15 = vpop.f32.mrf.mxu1 }
 0x1be   :  { %v185_v16 = vadd.f32 %v216_v14, %v184_v15 }
 0x1bf   :  { %v238_v17 = vpop.f32.mrf.mxu1 }
 0x1c0   :  { %252 = vtanh.f32 %v185_v16 }
 0x1c1   :  { %v187_v18 = vpop.f32.mrf.mxu1 }
 0x1c3   :  { %v239_v19 = vpop.f32.mrf.mxu1 }
 0x1cd   :  { %v253_v21 = vpop.eup %252 }
 0x1ce   :  { %v198_v22 = vmul.f32 %v253_v21, %v220_v20 }
 0x1d0   :  { %v199_v23 = vsel %vm146_vm2, %v198_v22, 0.0 }
 0x1d1   :  { %200 = vadd.xlane.f32.xlu0 %v199_v23 }
 0x25a   :  { %v201_v25 = vpop.xlane.xlu0 %200 }
 0x25b   :  { %v204_v26 = vadd.f32 %v203_v24, %v201_v25 }
 0x25d   :  { %206 = vst.msk [vmem:[%s390_s6] sm:$0xff] %vm205_vm3, %v204_v26 }
 0x25e   :  { %211 = vsyncpa [#allocation4], 1 }
 0x25f   :  { %212 = vsyncpa [#allocation6], 1 }

</bundles_post_ra>
